<compile_context>
chip_gen: v5e
topology: v5e:2x2
jax: 0.10.0
libtpu: 0.0.40
codegen_flags: <defaults>
</compile_context>

<pallas_src>
import functools

import jax
import jax.numpy as jnp
import numpy as np
from jax import lax
from jax.experimental import pallas as pl
from jax.experimental.pallas import tpu as pltpu


_SUBLANE = 8      # f32 sublane tile
C_PAD = 128       # lane-dense logits width (true num_classes sliced in wrapper)

_VMEM = pl.BlockSpec(memory_space=pltpu.MemorySpace.VMEM)


# ----------------------------------------------------------------------------
# Pallas kernels
# ----------------------------------------------------------------------------
def rnn_single_step_kernel(xs_ref, w12_ref, b12_ref, w3_ref, b3_ref,
                           out_ref, state_ref):
    """One rnn_single.forward step, fully fused (fc1+fc2 as one matmul).

    xs_ref  : (B_pad, D+H) bf16   concat([input, state], axis=1)
    w12_ref : (D+H, H)     bf16   stacked [fc1.weight^T ; fc2.weight^T]
    b12_ref : (1, H)       f32    fc1.bias + fc2.bias
    w3_ref  : (H, C_PAD)   f32    fc3.weight^T zero-padded to 128 columns
    b3_ref  : (1, C_PAD)   f32
    out_ref : (B_pad, C_PAD) f32  logits (lane-dense, sliced in wrapper)
    state_ref : (B_pad, H) f32    new state
    """
    gate = (jnp.dot(xs_ref[...], w12_ref[...],
                    preferred_element_type=jnp.float32) + b12_ref[...])
    h = jnp.maximum(gate, 0.0)                                   # ReLU
    state_ref[...] = h.astype(state_ref.dtype)
    out_ref[...] = (jnp.dot(h, w3_ref[...],
                            preferred_element_type=jnp.float32)
                    + b3_ref[...]).astype(out_ref.dtype)


def rnn_single_seq_kernel(x_ref, s0_ref, w1_ref, b12_ref, w2_ref, w3_ref,
                          b3_ref, out_ref, state_ref, hbuf_sc,
                          *, seq_len, batch_pad):
    """T recurrent rnn_single steps fused into one kernel invocation.

    x_ref   : (T*B_pad, D) bf16   all timesteps (rows t*B_pad:(t+1)*B_pad = step t)
    s0_ref  : (B_pad, H)   f32    initial state
    w1_ref  : (D, H)       bf16   fc1.weight^T (hoisted projection)
    b12_ref : (1, H)       f32    fc1.bias + fc2.bias (folded out of the loop)
    w2_ref  : (H, H)       f32    fc2.weight^T (recurrent)
    w3_ref  : (H, C_PAD)   f32    lane-dense fc3 head
    out_ref : (T*B_pad, C_PAD) f32
    state_ref : (B_pad, H) f32    final state
    hbuf_sc : (T*B_pad, H) f32    scratch: fc1 projection, overwritten in place
                                  by each step's hidden state
    """
    # Hoist fc1 out of the recurrence: one big bf16 matmul, bias (b1+b2) folded.
    hbuf_sc[...] = (jnp.dot(x_ref[...], w1_ref[...],
                            preferred_element_type=jnp.float32) + b12_ref[...])
    w2 = w2_ref[...]          # hoist the (H, H) weight load out of the serial loop

    def step(t, h):
        lo = pl.multiple_of(t * batch_pad, _SUBLANE)
        rows = pl.ds(lo, batch_pad)
        # TODO(synk): on v5e, a VPU broadcast-multiply + reduce formulation of
        # this (B,H)@(H,H) step may beat the serial MXU->MRF round trip at H=32.
        gate = hbuf_sc[rows, :] + jnp.dot(h, w2,
                                          preferred_element_type=jnp.float32)
        h_new = jnp.maximum(gate, 0.0)
        hbuf_sc[rows, :] = h_new      # overwrite proj block t with hidden state t
        return h_new

    h_final = lax.fori_loop(0, seq_len, step, s0_ref[...],
                            unroll=min(8, seq_len))
    state_ref[...] = h_final.astype(state_ref.dtype)
    # fc3 head applied once to the whole hidden slab (lane-dense output).
    out_ref[...] = (jnp.dot(hbuf_sc[...], w3_ref[...],
                            preferred_element_type=jnp.float32)
                    + b3_ref[...]).astype(out_ref.dtype)


# ----------------------------------------------------------------------------
# Wrappers
# ----------------------------------------------------------------------------
def _round_up(n, m):
    return ((n + m - 1) // m) * m


def _pad_rows(a, rows_to):
    pad = rows_to - a.shape[0]
    if pad == 0:
        return a
    return jnp.pad(a, ((0, pad),) + ((0, 0),) * (a.ndim - 1))


@functools.partial(jax.jit, static_argnames=("num_classes",))
def rnn_single_forward(x, state, packed, *, num_classes=2):
    """Equivalent of rnn_single.forward(input, state) -> (output, state)."""
    B = x.shape[0]
    H = state.shape[1]
    B_pad = _round_up(max(B, _SUBLANE), _SUBLANE)
    xs = jnp.concatenate(
        [_pad_rows(x, B_pad), _pad_rows(state, B_pad)], axis=1
    ).astype(jnp.bfloat16)
    out_p, state_p = pl.pallas_call(
        rnn_single_step_kernel,
        out_shape=(jax.ShapeDtypeStruct((B_pad, C_PAD), jnp.float32),
                   jax.ShapeDtypeStruct((B_pad, H), jnp.float32)),
        in_specs=[_VMEM] * 5,
        out_specs=(_VMEM, _VMEM),
    )(xs, packed["w12_bf16"], packed["b12"], packed["w3p"], packed["b3p"])
    return out_p[:B, :num_classes], state_p[:B]


@functools.partial(jax.jit, static_argnames=("num_classes",))
def rnn_single_sequence(x_seq, state0, packed, *, num_classes=2):
    """Run the rnn_single cell over a (T, B, D) sequence in ONE pallas_call."""
    T, B, D = x_seq.shape
    H = state0.shape[1]
    B_pad = _round_up(max(B, _SUBLANE), _SUBLANE)
    x2d = jnp.pad(x_seq, ((0, 0), (0, B_pad - B), (0, 0))) \
             .reshape(T * B_pad, D).astype(jnp.bfloat16)
    s0 = _pad_rows(state0, B_pad)
    out2d, final_state = pl.pallas_call(
        functools.partial(rnn_single_seq_kernel, seq_len=T, batch_pad=B_pad),
        out_shape=(jax.ShapeDtypeStruct((T * B_pad, C_PAD), jnp.float32),
                   jax.ShapeDtypeStruct((B_pad, H), jnp.float32)),
        in_specs=[_VMEM] * 7,
        out_specs=(_VMEM, _VMEM),
        scratch_shapes=[pltpu.VMEM((T * B_pad, H), jnp.float32)],
    )(x2d, s0, packed["w1_bf16"], packed["b12"], packed["w2"],
      packed["w3p"], packed["b3p"])
    out = out2d.reshape(T, B_pad, C_PAD)[:, :B, :num_classes]
    return out, final_state[:B]


# ----------------------------------------------------------------------------
# Parameter init (mirrors PyTorch nn.Linear default init, weights stored as
# W^T) + packing of the kernel-friendly derived tensors (done once, not per call).
# ----------------------------------------------------------------------------
def init_params(key, input_size, ndims, num_classes=2):
    def linear(key, fan_in, fan_out):
        k = 1.0 / np.sqrt(fan_in)
        kw, kb = jax.random.split(key)
        w_t = jax.random.uniform(kw, (fan_in, fan_out), jnp.float32, -k, k)
        b = jax.random.uniform(kb, (1, fan_out), jnp.float32, -k, k)
        return w_t, b

    k1, k2, k3 = jax.random.split(key, 3)
    w1t, b1 = linear(k1, input_size, ndims)       # fc1
    w2t, b2 = linear(k2, ndims, ndims)            # fc2
    w3t, b3 = linear(k3, ndims, num_classes)      # fc3
    return (w1t, b1, w2t, b2, w3t, b3)


def pack_params(raw):
    w1t, b1, w2t, b2, w3t, b3 = raw
    H = w2t.shape[0]
    C = w3t.shape[1]
    w3p = jnp.zeros((H, C_PAD), jnp.float32).at[:, :C].set(w3t)
    b3p = jnp.zeros((1, C_PAD), jnp.float32).at[:, :C].set(b3)
    return dict(
        # single-step path: fc1+fc2 fused into one stacked bf16 weight
        w12_bf16=jnp.concatenate([w1t, w2t], axis=0).astype(jnp.bfloat16),
        # folded bias row (b1 + b2), shared by both kernels
        b12=(b1 + b2).astype(jnp.float32),
        # sequence path: fc1 (bf16, hoisted) and fc2 (f32, recurrent) kept apart
        w1_bf16=w1t.astype(jnp.bfloat16),
        w2=w2t,
        # lane-dense fc3 head (output columns zero-padded to 128)
        w3p=w3p,
        b3p=b3p,
    )


# ----------------------------------------------------------------------------
# Pure-JAX f32 references (correctness check)
# ----------------------------------------------------------------------------
def rnn_single_reference(x, state, raw):
    w1t, b1, w2t, b2, w3t, b3 = raw
    new_state = jnp.maximum(x @ w1t + b1 + state @ w2t + b2, 0.0)
    out = new_state @ w3t + b3
    return out, new_state


def rnn_single_sequence_reference(x_seq, state0, raw):
    def step(state, x_t):
        out, new_state = rnn_single_reference(x_t, state, raw)
        return new_state, out

    final_state, outs = lax.scan(step, state0, x_seq)
    return outs, final_state


# ----------------------------------------------------------------------------
if __name__ == "__main__":
    B = 2
    INPUT_SIZE = 512          # resnet18/resnet34 branch of the module
    NDIMS = 32
    NUM_CLASSES = 2
    T = 8                     # sequence length for the fused recurrence demo

    key = jax.random.PRNGKey(0)
    key, kx, ks = jax.random.split(key, 3)
    x = jax.random.normal(kx, (B, INPUT_SIZE), jnp.float32)
    x_seq = jax.random.normal(ks, (T, B, INPUT_SIZE), jnp.float32)
    state0 = jnp.zeros((B, NDIMS), jnp.float32)     # init_hidden(batch_size)

    raw = init_params(key, INPUT_SIZE, NDIMS, NUM_CLASSES)
    packed = pack_params(raw)

    # Tolerances loosened to ~2e-2 because matmul inputs are bf16 (f32 accum).
    RTOL = ATOL = 2e-2

    # --- single forward step (the module's forward) ---
    out, new_state = rnn_single_forward(x, state0, packed,
                                        num_classes=NUM_CLASSES)
    out = jax.block_until_ready(out)
    new_state = jax.block_until_ready(new_state)

    ref_out, ref_state = rnn_single_reference(x, state0, raw)
    np.testing.assert_allclose(np.asarray(out), np.asarray(ref_out),
                               rtol=RTOL, atol=ATOL)
    np.testing.assert_allclose(np.asarray(new_state), np.asarray(ref_state),
                               rtol=RTOL, atol=ATOL)
    assert out.shape == (B, NUM_CLASSES) and new_state.shape == (B, NDIMS)

    # --- fused T-step recurrence (single pallas_call) ---
    seq_out, seq_state = rnn_single_sequence(x_seq, state0, packed,
                                             num_classes=NUM_CLASSES)
    seq_out = jax.block_until_ready(seq_out)
    seq_state = jax.block_until_ready(seq_state)

    ref_seq_out, ref_seq_state = rnn_single_sequence_reference(
        x_seq, state0, raw)
    np.testing.assert_allclose(np.asarray(seq_out), np.asarray(ref_seq_out),
                               rtol=RTOL, atol=ATOL)
    np.testing.assert_allclose(np.asarray(seq_state), np.asarray(ref_seq_state),
                               rtol=RTOL, atol=ATOL)
    assert seq_out.shape == (T, B, NUM_CLASSES)

    print("KERNEL_OK")
</pallas_src>

<mosaic_0001>
module attributes {stable_mosaic.version = 11 : i64} {
  func.func @rnn_single_step_kernel(%arg0: memref<8x544xbf16, #tpu.memory_space<vmem>>, %arg1: memref<544x32xbf16, #tpu.memory_space<vmem>>, %arg2: memref<1x32xf32, #tpu.memory_space<vmem>>, %arg3: memref<32x128xf32, #tpu.memory_space<vmem>>, %arg4: memref<1x128xf32, #tpu.memory_space<vmem>>, %arg5: memref<8x128xf32, #tpu.memory_space<vmem>>, %arg6: memref<8x32xf32, #tpu.memory_space<vmem>>) attributes {dimension_semantics = [], scalar_prefetch = 0 : i64, scratch_operands = 0 : i64, tpu.core_type = #tpu.core_type<tc>} {
    %c0 = arith.constant 0 : index
    %c0_0 = arith.constant 0 : index
    %0 = vector.load %arg0[%c0, %c0_0] : memref<8x544xbf16, #tpu.memory_space<vmem>>, vector<8x544xbf16>
    %c0_1 = arith.constant 0 : index
    %c0_2 = arith.constant 0 : index
    %1 = vector.load %arg1[%c0_1, %c0_2] : memref<544x32xbf16, #tpu.memory_space<vmem>>, vector<544x32xbf16>
    %cst = arith.constant dense<0.000000e+00> : vector<8x32xf32>
    %2 = tpu.matmul %0, %1, %cst {dimension_numbers = #tpu.dot_dimension_numbers<[1], [0], [0], [1], [0, 0, 1, 1], [], []>} : vector<8x544xbf16>, vector<544x32xbf16>, vector<8x32xf32> -> vector<8x32xf32>
    %c0_3 = arith.constant 0 : index
    %c0_4 = arith.constant 0 : index
    %3 = vector.load %arg2[%c0_3, %c0_4] : memref<1x32xf32, #tpu.memory_space<vmem>>, vector<1x32xf32>
    %4 = vector.broadcast %3 : vector<1x32xf32> to vector<8x32xf32>
    %5 = arith.addf %2, %4 : vector<8x32xf32>
    %cst_5 = arith.constant 0.000000e+00 : f32
    %6 = vector.broadcast %cst_5 : f32 to vector<8x32xf32>
    %7 = arith.maximumf %5, %6 : vector<8x32xf32>
    %c0_6 = arith.constant 0 : index
    %c0_7 = arith.constant 0 : index
    %8 = vector.load %arg6[%c0_6, %c0_7] : memref<8x32xf32, #tpu.memory_space<vmem>>, vector<8x32xf32>
    tpu.vector_store %arg6[%c0_6, %c0_7], %7 {strides = array<i32>} : memref<8x32xf32, #tpu.memory_space<vmem>>, vector<8x32xf32>,
    %c0_8 = arith.constant 0 : index
    %c0_9 = arith.constant 0 : index
    %9 = vector.load %arg3[%c0_8, %c0_9] : memref<32x128xf32, #tpu.memory_space<vmem>>, vector<32x128xf32>
    %cst_10 = arith.constant dense<0.000000e+00> : vector<8x128xf32>
    %10 = tpu.matmul %7, %9, %cst_10 {dimension_numbers = #tpu.dot_dimension_numbers<[1], [0], [0], [1], [0, 0, 1, 1], [], []>} : vector<8x32xf32>, vector<32x128xf32>, vector<8x128xf32> -> vector<8x128xf32>
    %c0_11 = arith.constant 0 : index
    %c0_12 = arith.constant 0 : index
    %11 = vector.load %arg4[%c0_11, %c0_12] : memref<1x128xf32, #tpu.memory_space<vmem>>, vector<1x128xf32>
    %12 = vector.broadcast %11 : vector<1x128xf32> to vector<8x128xf32>
    %13 = arith.addf %10, %12 : vector<8x128xf32>
    %c0_13 = arith.constant 0 : index
    %c0_14 = arith.constant 0 : index
    %14 = vector.load %arg5[%c0_13, %c0_14] : memref<8x128xf32, #tpu.memory_space<vmem>>, vector<8x128xf32>
    tpu.vector_store %arg5[%c0_13, %c0_14], %13 {strides = array<i32>} : memref<8x128xf32, #tpu.memory_space<vmem>>, vector<8x128xf32>,
    return
  }
}

</mosaic_0001>

<bundles_post_ra>
// kernel: rnn_single_forward.1
= control target key start
LH: loop header
LB: loop body
LE: loop exit
PB: predicated region body
PF: predicated region fallthrough
CT: control target
= control target key end

     0   :  { %vm319_vm0 = vcmask 261120   ;;  %s777_s1 = inlined_call_operand.vmem [shape: bf16[544,32], index: 1, kind: input, shape index: {}]   ;;  %s778_s2 = inlined_call_operand.vmem [shape: f32[1,32], index: 2, kind: input, shape index: {}]   ;;  %s779_s0 = inlined_call_operand.vmem [shape: bf16[8,544], index: 0, kind: input, shape index: {}]   ;;  %s780_s4 = inlined_call_operand.vmem [shape: f32[1,128], index: 4, kind: input, shape index: {}]   ;;  %s781_s3 = inlined_call_operand.vmem [shape: f32[32,128], index: 3, kind: input, shape index: {}]   ;;  %s782_s6 = inlined_call_operand.vmem [shape: f32[8,32], index: 6, kind: output, shape index: {1}]   ;;  %s783_s5 = inlined_call_operand.vmem [shape: f32[8,128], index: 5, kind: output, shape index: {0}]  }
   0x1   :  { %v575_v0 = vld [vmem:[%s777_s1 + $0x38] sm:$0xff]  ;;  %v574_v4 = vld [vmem:[%s777_s1 + $0x30] sm:$0xff]  ;;  %v573_v8 = vld [vmem:[%s777_s1 + $0x28] sm:$0xff] }
   0x2   :  { %v591_v1 = vld [vmem:[%s777_s1 + $0xb8] sm:$0xff]  ;;  %323 = vmatpush.bf16.msra.mxu0 %v575_v0  ;;  %v590_v5 = vld [vmem:[%s777_s1 + $0xb0] sm:$0xff]  ;;  %v589_v9 = vld [vmem:[%s777_s1 + $0xa8] sm:$0xff] }
   0x3   :  { %v599_v2 = vld [vmem:[%s777_s1 + $0xf8] sm:$0xff]  ;;  %349 = vmatpush.bf16.msra.mxu2 %v591_v1  ;;  %v598_v6 = vld [vmem:[%s777_s1 + $0xf0] sm:$0xff]  ;;  %v597_v10 = vld [vmem:[%s777_s1 + $0xe8] sm:$0xff] }
   0x4   :  { %v583_v3 = vld [vmem:[%s777_s1 + $0x78] sm:$0xff]  ;;  %362 = vmatpush.bf16.msra.mxu3 %v599_v2  ;;  %v582_v7 = vld [vmem:[%s777_s1 + $0x70] sm:$0xff]  ;;  %v581_v11 = vld [vmem:[%s777_s1 + $0x68] sm:$0xff] }
   0x5   :  { %336 = vmatpush.bf16.msra.mxu1 %v583_v3  ;;  %v572_v12 = vld [vmem:[%s777_s1 + $0x20] sm:$0xff]  ;;  %v571_v16 = vld [vmem:[%s777_s1 + $0x18] sm:$0xff]  ;;  %v570_v20 = vld [vmem:[%s777_s1 + $0x10] sm:$0xff] }
   0x6   :  { %324 = vmatpush.bf16.msra.mxu0 %v574_v4  ;;  %v588_v13 = vld [vmem:[%s777_s1 + $0xa0] sm:$0xff]  ;;  %v587_v17 = vld [vmem:[%s777_s1 + $0x98] sm:$0xff]  ;;  %v586_v21 = vld [vmem:[%s777_s1 + $0x90] sm:$0xff] }
   0x7   :  { %350 = vmatpush.bf16.msra.mxu2 %v590_v5  ;;  %v596_v14 = vld [vmem:[%s777_s1 + $0xe0] sm:$0xff]  ;;  %v595_v18 = vld [vmem:[%s777_s1 + $0xd8] sm:$0xff]  ;;  %v594_v22 = vld [vmem:[%s777_s1 + $0xd0] sm:$0xff] }
   0x8   :  { %363 = vmatpush.bf16.msra.mxu3 %v598_v6  ;;  %v580_v15 = vld [vmem:[%s777_s1 + $0x60] sm:$0xff]  ;;  %v579_v19 = vld [vmem:[%s777_s1 + $0x58] sm:$0xff]  ;;  %v578_v23 = vld [vmem:[%s777_s1 + $0x50] sm:$0xff] }
   0x9   :  { %337 = vmatpush.bf16.msra.mxu1 %v582_v7  ;;  %v569_v24 = vld [vmem:[%s777_s1 + $0x8] sm:$0xff]  ;;  %v23_v26 = vld [vmem:[%s779_s0] sm:$0xff]  ;;  %v25_v44 = vld [vmem:[%s779_s0 + $0x10] sm:$0xf] }
   0xa   :  { %325 = vmatpush.bf16.msra.mxu0 %v573_v8  ;;  %v585_v25 = vld [vmem:[%s777_s1 + $0x88] sm:$0xff]  ;;  %v101_v30 = vunpack.c.l.b16 %v23_v26  ;;  %v568_v32 = vld [vmem:[%s777_s1] sm:$0xff]  ;;  %v102_v35 = vunpack.c.h.b16 %v23_v26  ;;  %v105_v45 = vunpack.c.l.b16 %v25_v44  ;;  %v393_v47 = vld [vmem:[%s781_s3 + $0x18] sm:$0xff] }
   0xb   :  { %351 = vmatpush.bf16.msra.mxu2 %v589_v9  ;;  %v24_v27 = vld [vmem:[%s779_s0 + $0x8] sm:$0xff]  ;;  %v584_v33 = vld [vmem:[%s777_s1 + $0x80] sm:$0xff]  ;;  %v392_v48 = vld [vmem:[%s781_s3 + $0x10] sm:$0xff] }
   0xc   :  { %364 = vmatpush.bf16.msra.mxu3 %v597_v10  ;;  %v593_v28 = vld [vmem:[%s777_s1 + $0xc8] sm:$0xff]  ;;  %v103_v31 = vunpack.c.l.b16 %v24_v27  ;;  %v104_v34 = vunpack.c.h.b16 %v24_v27  ;;  %v592_v36 = vld [vmem:[%s777_s1 + $0xc0] sm:$0xff]  ;;  %v106_v39 = vpack.c.b16 %v101_v30, %v101_v30  ;;  %v107_v42 = vpack.c.b16 %v102_v35, %v102_v35 }
   0xd   :  { %338 = vmatpush.bf16.msra.mxu1 %v581_v11  ;;  %v577_v29 = vld [vmem:[%s777_s1 + $0x48] sm:$0xff]  ;;  %v576_v37 = vld [vmem:[%s777_s1 + $0x40] sm:$0xff]  ;;  %v110_v46 = vpack.c.b16 %v105_v45, %v105_v45 }
   0xe   :  { %326 = vmatpush.bf16.msra.mxu0 %v572_v12  ;;  %v601_v38 = vld [vmem:[%s777_s1 + $0x108] sm:$0xff]  ;;  %v108_v40 = vpack.c.b16 %v103_v31, %v103_v31  ;;  %v109_v41 = vpack.c.b16 %v104_v34, %v104_v34  ;;  %v600_v43 = vld [vmem:[%s777_s1 + $0x100] sm:$0xff] }
   0xf   :  { %352 = vmatpush.bf16.msra.mxu2 %v588_v13  ;;  %v391_v49 = vld [vmem:[%s781_s3 + $0x8] sm:$0xff]  ;;  %v390_v50 = vld [vmem:[%s781_s3] sm:$0xff] }
  0x10   :  { %365 = vmatpush.bf16.msra.mxu3 %v596_v14  ;;  %v602_v52 = vld [vmem:[%s778_s2] ss:$0 sm:$0xff] }
  0x11   :  { %339 = vmatpush.bf16.msra.mxu1 %v580_v15  ;;  %v603_v4 = vld [vmem:[%s780_s4] ss:$0 sm:$0xff] }
  0x12   :  { %327 = vmatpush.bf16.msra.mxu0 %v571_v16 }
  0x13   :  { %353 = vmatpush.bf16.msra.mxu2 %v587_v17 }
  0x14   :  { %366 = vmatpush.bf16.msra.mxu3 %v595_v18 }
  0x15   :  { %340 = vmatpush.bf16.msra.mxu1 %v579_v19 }
  0x16   :  { %328 = vmatpush.bf16.msra.mxu0 %v570_v20 }
  0x17   :  { %354 = vmatpush.bf16.msra.mxu2 %v586_v21 }
  0x18   :  { %367 = vmatpush.bf16.msra.mxu3 %v594_v22 }
  0x19   :  { %341 = vmatpush.bf16.msra.mxu1 %v578_v23 }
  0x1a   :  { %329 = vmatpush.bf16.msra.mxu0 %v569_v24 }
  0x1b   :  { %355 = vmatpush.bf16.msra.mxu2 %v585_v25 }
  0x1c   :  { %368 = vmatpush.bf16.msra.mxu3 %v593_v28 }
  0x1d   :  { %342 = vmatpush.bf16.msra.mxu1 %v577_v29 }
  0x1e   :  { %330 = vmatpush.bf16.msra.mxu0 %v568_v32 }
  0x1f   :  { %356 = vmatpush.bf16.msra.mxu2 %v584_v33 }
  0x20   :  { %369 = vmatpush.bf16.msra.mxu3 %v592_v36 }
  0x21   :  { %343 = vmatpush.bf16.msra.mxu1 %v576_v37  ;;  %331 = vmatmul.bf16.vlgmr.msra.gmra.mxu0 %v106_v39 }
  0x22   :  { %381 = vmatpush.bf16.msrb.mxu0 %v601_v38  ;;  %357 = vmatmul.bf16.vlgmr.msra.gmra.mxu2 %v108_v40 }
  0x23   :  { %370 = vmatmul.bf16.vlgmr.msra.gmra.mxu3 %v109_v41 }
  0x24   :  { %344 = vmatmul.bf16.vlgmr.msra.gmra.mxu1 %v107_v42 }
  0x25   :  { %413 = vmatpush.msrb.mxu1 %v393_v47 }
  0x26   :  { %382 = vmatpush.bf16.msrb.mxu0 %v600_v43 }
  0x27   :  { %414 = vmatpush.msrb.mxu1 %v392_v48 }
  0x29   :  { %415 = vmatpush.msrb.mxu1 %v391_v49 }
  0x2b   :  { %416 = vmatpush.msrb.mxu1 %v390_v50 }
  0x31   :  { %566 = vmatmul.msk.bf16.vlgmr.msrb.gmra.mxu0 %vm319_vm0, %v110_v46 }
  0x9e   :  { %v332_v51 = vpop.f32.mrf.mxu0 }
  0x9f   :  { %v333_v54 = vadd.f32 %v602_v52, %v332_v51 }
  0xa1   :  { %v345_v53 = vpop.f32.mrf.mxu1 }
  0xa2   :  { %v346_v58 = vadd.f32 %v345_v53, %v333_v54 }
  0xa5   :  { %v358_v55 = vpop.f32.mrf.mxu2 }
  0xa6   :  { %v371_v56 = vpop.f32.mrf.mxu3  ;;  %v334_v57 = vpop.f32.mrf.mxu0  ;;  %v359_v60 = vadd.f32 %v358_v55, %v346_v58 }
  0xa8   :  { %v372_v62 = vadd.f32 %v371_v56, %v359_v60 }
  0xa9   :  { %v347_v59 = vpop.f32.mrf.mxu1 }
  0xad   :  { %v360_v61 = vpop.f32.mrf.mxu2 }
  0xae   :  { %v373_v63 = vpop.f32.mrf.mxu3  ;;  %v384_v0 = vpop.f32.mrf.mxu0 }
  0xaf   :  { %v385_v1 = vadd.f32 %v384_v0, %v372_v62 }
  0xb1   :  { %v388_v2 = vmax.f32 %v385_v1, 0.0 }
  0xb3   :  { %389 = vst.msk [vmem:[%s782_s6] sm:$0xff] %vm319_vm0, %v388_v2  ;;  %567 = vmatmul.msk.f32.vlgmr.msrb.gmra.mxu1 %vm319_vm0, %v388_v2 }
  0xb6   :  { %v386_v3 = vpop.f32.mrf.mxu0 }
 0x130   :  { %v418_v5 = vpop.f32.mrf.mxu1 }
 0x131   :  { %v419_v6 = vadd.f32 %v603_v4, %v418_v5 }
 0x133   :  { %421 = vst [vmem:[%s783_s5] sm:$0xff] %v419_v6 }

</bundles_post_ra>
